<compile_context>
chip_gen: v7x
topology: tpu7x:2x2x1
jax: 0.10.0
libtpu: 0.0.40
codegen_flags: <defaults>
</compile_context>

<pallas_src>
import functools

import jax
import jax.numpy as jnp
from jax import lax
from jax.experimental import pallas as pl
from jax.experimental.pallas import tpu as pltpu


def _integral_l1_kernel(sel_ref, keep_ref, x_ref, t_ref, w_ref, part_ref, *,
                        batch_size, block_rows, num_joints, w_resident):
    pid = pl.program_id(0)

    x = x_ref[...].astype(jnp.float32)                                 # (TB, L)
    t = t_ref[...].astype(jnp.float32)                                 # (TB, L)

    if w_resident:
        # Whole weight matrix is resident in VMEM (DMA'd once); slice our rows.
        start = pl.multiple_of(pid * block_rows, block_rows)
        w = w_ref[pl.ds(start, block_rows), :].astype(jnp.float32)     # (TB, J)
    else:
        w = w_ref[...].astype(jnp.float32)                              # (TB, J)

    # Zero the unused coordinate lanes (d >= 2) with a select BEFORE the matmul
    # so NaN/Inf there cannot poison the MXU accumulate (NaN * 0 = NaN).
    diff = jnp.where(keep_ref[...] > 0.5, jnp.abs(x - t), 0.0)          # (TB, L)

    # Constant 0/1 selector: applies the "[:, :, :2]" slice and the per-joint
    # coordinate sum in one matmul on the otherwise-idle MXU.  HIGHEST keeps
    # the f32 values of `diff` exact (DEFAULT would round to one bf16 pass and
    # shift the loss ~1e-3 relative).
    per_joint = jnp.dot(diff, sel_ref[...],
                        precision=lax.Precision.HIGHEST,
                        preferred_element_type=jnp.float32)             # (TB, J)

    # Mask rows past the true batch size (partial last block): select, so
    # undefined padded data (possibly NaN) never reaches the partial sum.
    row = pid * block_rows + lax.broadcasted_iota(
        jnp.int32, (block_rows, num_joints), 0)
    contrib = jnp.where(row < batch_size, per_joint * w, 0.0)           # (TB, J)

    # One (1, J) partial row per grid step; no cross-step carry, no RMW.
    part_ref[...] = jnp.sum(contrib, axis=0, keepdims=True)


def _round_up(x, m):
    return (x + m - 1) // m * m


def _tpu_vmem_capacity_bytes():
    """Best-effort physical VMEM size (v5e/v6e: 128 MiB, v7x: 64 MiB per TC)."""
    try:
        info = pltpu.get_tpu_info()
        cap = getattr(info, "vmem_capacity_bytes", None)
        if cap:
            return int(cap)
    except Exception:
        pass
    return 64 << 20            # conservative fallback, safe on every generation


def integral_l1_loss_pallas(output, target, target_weight, size_average=True, *,
                            block_rows=None, force_w_blocked=False):
    """Pallas path. output/target: (B, J, D>=2); target_weight: (B, J, 1) or (B, J)."""
    B, J, D = output.shape
    assert D >= 2, "need at least x,y coordinates"
    assert target.shape == (B, J, D)
    assert target_weight.shape in ((B, J), (B, J, 1)), (
        "target_weight must broadcast over the coordinate dim exactly like the "
        "PyTorch reference, i.e. shape (B, J, 1) or (B, J)")

    L = J * D
    x2 = output.reshape(B, L)                 # contiguous -> free reshape
    t2 = target.reshape(B, L)
    w2 = target_weight.reshape(B, J)          # keep the weight narrow (lane-dense)

    # Constant selector (L, J): sel[l, j] = 1 iff lane l is one of joint j's
    # first two coordinates.  Constant lane-keep mask (1, L): 1 iff coord < 2.
    l_idx = jnp.arange(L, dtype=jnp.int32)[:, None]
    lo = (jnp.arange(J, dtype=jnp.int32) * D)[None, :]
    sel = ((l_idx >= lo) & (l_idx < lo + 2)).astype(jnp.float32)         # (L, J)
    keep = ((jnp.arange(L, dtype=jnp.int32) % D) < 2).astype(
        jnp.float32).reshape(1, L)                                       # (1, L)

    # ---- VMEM-budgeted block sizing (true lane-padded footprint). ----
    Lp = _round_up(L, 128)
    Jp = _round_up(J, 128)
    x_item = jnp.dtype(output.dtype).itemsize
    t_item = jnp.dtype(target.dtype).itemsize
    w_item = jnp.dtype(target_weight.dtype).itemsize
    # Native tile sublane granularity: 8 rows for 4-byte, 16 for 2-byte, 32 for 1-byte.
    sub = max(8, 8 * (4 // max(1, min(x_item, t_item))))

    cap = _tpu_vmem_capacity_bytes()
    budget = min(int(cap * 0.45), 56 << 20)

    # Keep the whole weight resident in VMEM (one DMA for the whole grid) when
    # its padded footprint is small; otherwise stream it per block.
    w_full_bytes = _round_up(max(B, 8), 8) * Jp * w_item
    w_resident = (not force_w_blocked) and (w_full_bytes <= (4 << 20))

    fixed = 2 * (_round_up(L, 8) * Jp * 4 + 8 * Lp * 4)      # sel + keep buffers
    fixed += (2 * w_full_bytes) if w_resident else 0
    fixed += 256 << 10                                       # misc slack
    avail = max(budget - fixed, 1 << 20)
    per_row = 2 * ((x_item + t_item) * Lp +                  # x,t double-buffered
                   (0 if w_resident else w_item * Jp))       # (+ w when streamed)

    tb = int(block_rows) if block_rows is not None else max(sub, avail // per_row)
    tb = max(1, min(tb, B))
    if tb < B:
        tb = max(sub, (tb // sub) * sub)                     # native-tile multiple
        if tb >= B:
            tb = B
    grid = pl.cdiv(B, tb)

    live_est = fixed + per_row * tb + 2 * grid * Jp * 4
    vmem_limit = int(min(cap * 0.9, max(32 << 20, live_est + (16 << 20))))

    if w_resident:
        Bp = grid * tb
        if Bp > B:
            w2 = jnp.pad(w2, ((0, Bp - B), (0, 0)))           # keeps pl.ds in-bounds
        w_spec = pl.BlockSpec((Bp, J), lambda i: (0, 0))      # constant index -> one DMA
    else:
        w_spec = pl.BlockSpec((tb, J), lambda i: (i, 0))      # streamed per block

    kernel = functools.partial(
        _integral_l1_kernel,
        batch_size=B, block_rows=tb, num_joints=J, w_resident=w_resident)

    partials = pl.pallas_call(
        kernel,
        out_shape=jax.ShapeDtypeStruct((grid, J), jnp.float32),
        grid_spec=pltpu.PrefetchScalarGridSpec(
            num_scalar_prefetch=0,
            grid=(grid,),
            in_specs=[
                pl.BlockSpec((L, J), lambda i: (0, 0)),       # sel   (constant)
                pl.BlockSpec((1, L), lambda i: (0, 0)),       # keep  (constant)
                pl.BlockSpec((tb, L), lambda i: (i, 0)),      # output rows
                pl.BlockSpec((tb, L), lambda i: (i, 0)),      # target rows
                w_spec,                                       # target_weight
            ],
            out_specs=pl.BlockSpec((1, J), lambda i: (i, 0)), # per-block partials
        ),
        compiler_params=pltpu.CompilerParams(
            dimension_semantics=("parallel",),                # v7x: both TensorCores
            vmem_limit_bytes=vmem_limit),
    )(sel, keep, x2, t2, w2)

    # Tiny final reduce + scaling in plain JAX (f32 partials; summation order
    # differs slightly from the reference but stays within loss-level tolerance).
    total = jnp.sum(partials) / jnp.float32(J)
    if size_average:
        total = total / jnp.float32(B)
    return total


def _integral_l1_loss_xla(output, target, target_weight, size_average=True):
    """Plain-JAX reference (and the fast path for tiny inputs)."""
    B, J, _ = output.shape
    pred = output[:, :, :2].astype(jnp.float32)
    tgt = target[:, :, :2].astype(jnp.float32)
    w = target_weight.reshape(B, J, 1).astype(jnp.float32)
    out = jnp.abs(pred - tgt) * w
    out = jnp.sum(out) / J
    if size_average:
        out = out / B
    return out


def integral_l1_loss(output, target, target_weight, size_average=True, **kw):
    """Dispatcher: tiny problems are pure pallas_call overhead -> let XLA fuse them."""
    B, J, D = output.shape
    if B * J * D < 8192:
        return _integral_l1_loss_xla(output, target, target_weight, size_average)
    return integral_l1_loss_pallas(output, target, target_weight, size_average, **kw)


if __name__ == "__main__":
    key = jax.random.PRNGKey(0)
    k1, k2, k3, k4, k5, k6, k7, k8, k9 = jax.random.split(key, 9)

    # Case 1: the module's natural small shape (batch=2, joints=8, coords=3),
    # single grid step, resident weight.
    B, J, D = 2, 8, 3
    output = jax.random.normal(k1, (B, J, D), dtype=jnp.float32)
    target = jax.random.normal(k2, (B, J, D), dtype=jnp.float32)
    weight = (jax.random.uniform(k3, (B, J, 1)) > 0.2).astype(jnp.float32)
    loss = jax.block_until_ready(
        integral_l1_loss_pallas(output, target, weight, size_average=True))
    ref = _integral_l1_loss_xla(output, target, weight, size_average=True)
    assert jnp.allclose(loss, ref, rtol=1e-5, atol=1e-6), (loss, ref)

    # Case 2: multi-step "parallel" grid with a partial last block (row masking),
    # zero-padded resident weight, non-binary weights, size_average=False.
    B2, J2, D2 = 37, 16, 3
    output2 = jax.random.normal(k4, (B2, J2, D2), dtype=jnp.float32)
    target2 = jax.random.normal(k5, (B2, J2, D2), dtype=jnp.float32)
    weight2 = jax.random.uniform(k6, (B2, J2, 1), dtype=jnp.float32)
    loss2 = jax.block_until_ready(
        integral_l1_loss_pallas(output2, target2, weight2,
                                size_average=False, block_rows=16))
    ref2 = _integral_l1_loss_xla(output2, target2, weight2, size_average=False)
    assert jnp.allclose(loss2, ref2, rtol=1e-4, atol=1e-5), (loss2, ref2)

    # Case 3: streamed (non-resident) weight path + partial last block.
    B3, J3, D3 = 20, 8, 3
    output3 = jax.random.normal(k7, (B3, J3, D3), dtype=jnp.float32)
    target3 = jax.random.normal(k8, (B3, J3, D3), dtype=jnp.float32)
    weight3 = jax.random.uniform(k9, (B3, J3, 1), dtype=jnp.float32)
    loss3 = jax.block_until_ready(
        integral_l1_loss_pallas(output3, target3, weight3, size_average=True,
                                block_rows=8, force_w_blocked=True))
    ref3 = _integral_l1_loss_xla(output3, target3, weight3, size_average=True)
    assert jnp.allclose(loss3, ref3, rtol=1e-4, atol=1e-5), (loss3, ref3)

    print("KERNEL_OK")
</pallas_src>

<mosaic_0001>
module attributes {stable_mosaic.version = 11 : i64} {
  func.func @_integral_l1_kernel(%arg0: i32, %arg1: memref<24x8xf32, #tpu.memory_space<vmem>>, %arg2: memref<1x24xf32, #tpu.memory_space<vmem>>, %arg3: memref<2x24xf32, #tpu.memory_space<vmem>>, %arg4: memref<2x24xf32, #tpu.memory_space<vmem>>, %arg5: memref<2x8xf32, #tpu.memory_space<vmem>>, %arg6: memref<1x8xf32, #tpu.memory_space<vmem>>) attributes {dimension_semantics = [#tpu.dimension_semantics<parallel>], iteration_bounds = array<i64: 1>, scalar_prefetch = 0 : i64, scratch_operands = 0 : i64, tpu.core_type = #tpu.core_type<tc>, window_params = [{pipeline_mode = #tpu.pipeline_mode<synchronous>, transform_indices = @transform_0, window_bounds = array<i64: 24, 8>}, {pipeline_mode = #tpu.pipeline_mode<synchronous>, transform_indices = @transform_1, window_bounds = array<i64: 1, 24>}, {transform_indices = @transform_2, window_bounds = array<i64: 2, 24>}, {transform_indices = @transform_3, window_bounds = array<i64: 2, 24>}, {pipeline_mode = #tpu.pipeline_mode<synchronous>, transform_indices = @transform_4, window_bounds = array<i64: 2, 8>}, {transform_indices = @transform_5, window_bounds = array<i64: 1, 8>}]} {
    %c0 = arith.constant 0 : index
    %c0_0 = arith.constant 0 : index
    %0 = vector.load %arg3[%c0, %c0_0] : memref<2x24xf32, #tpu.memory_space<vmem>>, vector<2x24xf32>
    %c0_1 = arith.constant 0 : index
    %c0_2 = arith.constant 0 : index
    %1 = vector.load %arg4[%c0_1, %c0_2] : memref<2x24xf32, #tpu.memory_space<vmem>>, vector<2x24xf32>
    %c2_i32 = arith.constant 2 : i32
    %2 = arith.muli %arg0, %c2_i32 : i32
    %3 = tpu.assume_multiple %2, 2 : i32
    %4 = arith.index_cast %3 : i32 to index
    %c0_3 = arith.constant 0 : index
    %5 = vector.load %arg5[%4, %c0_3] : memref<2x8xf32, #tpu.memory_space<vmem>>, vector<2x8xf32>
    %c0_4 = arith.constant 0 : index
    %c0_5 = arith.constant 0 : index
    %6 = vector.load %arg2[%c0_4, %c0_5] : memref<1x24xf32, #tpu.memory_space<vmem>>, vector<1x24xf32>
    %cst = arith.constant 5.000000e-01 : f32
    %7 = vector.broadcast %cst : f32 to vector<1x24xf32>
    %8 = arith.cmpf ogt, %6, %7 : vector<1x24xf32>
    %9 = arith.subf %0, %1 : vector<2x24xf32>
    %10 = math.absf %9 : vector<2x24xf32>
    %cst_6 = arith.constant 0.000000e+00 : f32
    %11 = vector.shape_cast %8 : vector<1x24xi1> to vector<1x24xi1>
    %12 = vector.broadcast %11 : vector<1x24xi1> to vector<2x24xi1>
    %13 = vector.broadcast %cst_6 : f32 to vector<2x24xf32>
    %14 = arith.select %12, %10, %13 : vector<2x24xi1>, vector<2x24xf32>
    %c0_7 = arith.constant 0 : index
    %c0_8 = arith.constant 0 : index
    %15 = vector.load %arg1[%c0_7, %c0_8] : memref<24x8xf32, #tpu.memory_space<vmem>>, vector<24x8xf32>
    %cst_9 = arith.constant dense<0.000000e+00> : vector<2x8xf32>
    %16 = tpu.matmul %14, %15, %cst_9 {dimension_numbers = #tpu.dot_dimension_numbers<[1], [0], [0], [1], [0, 0, 1, 1], [], []>, precision = #tpu.contract_precision<fp32>} : vector<2x24xf32>, vector<24x8xf32>, vector<2x8xf32> -> vector<2x8xf32>
    %c2_i32_10 = arith.constant 2 : i32
    %17 = arith.muli %arg0, %c2_i32_10 : i32
    %18 = tpu.iota {dimensions = array<i32: 0>} : vector<2x8xi32>
    %19 = vector.broadcast %17 : i32 to vector<2x8xi32>
    %20 = arith.addi %19, %18 : vector<2x8xi32>
    %c2_i32_11 = arith.constant 2 : i32
    %21 = vector.broadcast %c2_i32_11 : i32 to vector<2x8xi32>
    %22 = arith.cmpi slt, %20, %21 : vector<2x8xi32>
    %23 = arith.mulf %16, %5 : vector<2x8xf32>
    %cst_12 = arith.constant 0.000000e+00 : f32
    %24 = vector.broadcast %cst_12 : f32 to vector<2x8xf32>
    %25 = arith.select %22, %23, %24 : vector<2x8xi1>, vector<2x8xf32>
    %cst_13 = arith.constant dense<0.000000e+00> : vector<8xf32>
    %26 = vector.multi_reduction <add>, %25, %cst_13 [0] : vector<2x8xf32> to vector<8xf32>
    %27 = vector.shape_cast %26 : vector<8xf32> to vector<1x8xf32>
    %c0_14 = arith.constant 0 : index
    %c0_15 = arith.constant 0 : index
    %28 = vector.load %arg6[%c0_14, %c0_15] : memref<1x8xf32, #tpu.memory_space<vmem>>, vector<1x8xf32>
    tpu.vector_store %arg6[%c0_14, %c0_15], %27 {strides = array<i32>} : memref<1x8xf32, #tpu.memory_space<vmem>>, vector<1x8xf32>,
    return
  }
  func.func @transform_0(%arg0: i32) -> (i32, i32) {
    %c0_i32 = arith.constant 0 : i32
    %c0_i32_0 = arith.constant 0 : i32
    %c0_i32_1 = arith.constant 0 : i32
    return %c0_i32, %c0_i32_0 : i32, i32
  }
  func.func @transform_1(%arg0: i32) -> (i32, i32) {
    %c0_i32 = arith.constant 0 : i32
    %c0_i32_0 = arith.constant 0 : i32
    %c0_i32_1 = arith.constant 0 : i32
    return %c0_i32, %c0_i32_0 : i32, i32
  }
  func.func @transform_2(%arg0: i32) -> (i32, i32) {
    %c0_i32 = arith.constant 0 : i32
    %c0_i32_0 = arith.constant 0 : i32
    return %arg0, %c0_i32 : i32, i32
  }
  func.func @transform_3(%arg0: i32) -> (i32, i32) {
    %c0_i32 = arith.constant 0 : i32
    %c0_i32_0 = arith.constant 0 : i32
    return %arg0, %c0_i32 : i32, i32
  }
  func.func @transform_4(%arg0: i32) -> (i32, i32) {
    %c0_i32 = arith.constant 0 : i32
    %c0_i32_0 = arith.constant 0 : i32
    %c0_i32_1 = arith.constant 0 : i32
    return %c0_i32, %c0_i32_0 : i32, i32
  }
  func.func @transform_5(%arg0: i32) -> (i32, i32) {
    %c0_i32 = arith.constant 0 : i32
    %c0_i32_0 = arith.constant 0 : i32
    return %arg0, %c0_i32 : i32, i32
  }
}

</mosaic_0001>

<bundles_post_ra>
// kernel: tpu_custom_call.1
= control target key start
LH: loop header
LB: loop body
LE: loop exit
PB: predicated region body
PF: predicated region fallthrough
CT: control target
= control target key end

     0   :  { %v31_v2 = vlaneseq  ;;  %v681_v3 = vmov 0.0|0.0   ;;  %vm682_vm0 = vmmov 0   ;;  %v683_v8 = vmov 0.0   ;;  %s777_s0 = inlined_call_operand.vmem [shape: f32[24,8], index: 0, kind: input, shape index: {}]   ;;  %s778_s1 = inlined_call_operand.vmem [shape: f32[1,24], index: 1, kind: input, shape index: {}]   ;;  %s779_s2 = inlined_call_operand.vmem [shape: f32[2,24], index: 2, kind: input, shape index: {}]   ;;  %s780_s3 = inlined_call_operand.vmem [shape: f32[2,24], index: 3, kind: input, shape index: {}]   ;;  %s781_s4 = inlined_call_operand.vmem [shape: f32[2,8], index: 4, kind: input, shape index: {}]   ;;  %s782_s5 = inlined_call_operand.hbm [shape: f32[1,8], index: 5, kind: output, shape index: {}]  }
   0x1   :  { %v37_v0 = vld [vmem:[%s777_s0] sm:$0xff]  ;;  %v38_v1 = vld [vmem:[%s777_s0 + $0x8] sm:$0xff]  ;;  %634 = vmatprep.subr.bf16.mxu0 %v681_v3  ;;  %625 = vmatprep.subr.bf16.mxu1 %v681_v3  ;;  %v39_v6 = vld [vmem:[%s777_s0 + $0x10] sm:$0xff] }
   0x2   :  { %v45_v4 = vand.u32 4294901760, %v37_v0  ;;  %v48_v5 = vand.u32 4294901760, %v38_v1  ;;  %v21_v7 = vld [vmem:[%s779_s2] sm:$0x3]  ;;  %604 = vmatprep.mubr.msk.f32.mxu0 %vm682_vm0, %v683_v8  ;;  %v738_v11 = vshrl.u32 %v31_v2, 7  ;;  %577 = vmatprep.mubr.msk.f32.mxu1 %vm682_vm0, %v683_v8 }
   0x3   :  { %v22_v9 = vld [vmem:[%s780_s3] sm:$0x3] }
   0x4   :  { %v26_v10 = vld [vmem:[%s778_s1] sm:$0x1]  ;;  %v626_v12 = vpack.c.bf16 %v48_v5, %v45_v4  ;;  %v124_v13 = vsub.f32 %v37_v0, %v45_v4  ;;  %v131_v14 = vsub.f32 %v38_v1, %v48_v5 }
   0x5   :  { %10 = vsyncpa [#allocation3], 0  ;;  %vm27_vm1 = vcmp.gt.f32.partialorder %v26_v10, 0.5  ;;  %v28_v15 = vsub.f32 %v21_v7, %v22_v9  ;;  %v33_v16 = vsub.s32 0, %v738_v11  ;;  %v51_v17 = vand.u32 4294901760, %v39_v6  ;;  %s685_s2 = smov [#allocation2]  }
   0x6   :  { %636 = vmatpush3.bf16.msra.mxu0 %v626_v12  ;;  %627 = vmatpush3.bf16.msra.mxu1 %v626_v12  ;;  %v684_v18 = vmov 0   ;;  %v125_v22 = vand.u32 4294901760, %v124_v13  ;;  %v132_v23 = vand.u32 4294901760, %v131_v14  ;;  %vm40_vm2 = vcmask 195584   ;;  %v25_v44 = vld [vmem:[%s781_s4] sm:$0x3] }
   0x7   :  { %v30_v19 = vsel %vm27_vm1, 1, %v684_v18  ;;  %602 = vmatprep.subr.mxu0 %v683_v8  ;;  %v29_v20 = vand.u32 2147483647, %v28_v15  ;;  %575 = vmatprep.subr.mxu1 %v683_v8  ;;  %v138_v25 = vsub.f32 %v39_v6, %v51_v17  ;;  %v632_v41 = vpack.c.bf16 %v131_v14, %v124_v13  ;;  %s539_s3 = sshll.u32 %s685_s2, 4  ;;  %s540_s3 = int_to_ptr.vmem [resolvable:$true] %s539_s3 }
   0x8   :  { %v34_v21 = vrot.slane %v30_v19, %v33_v16  ;;  %v126_v27 = vsub.f32 %v124_v13, %v125_v22  ;;  %v133_v28 = vsub.f32 %v131_v14, %v132_v23  ;;  %v638_v31 = vpack.c.bf16 %v132_v23, %v125_v22  ;;  %s657_s4 = scalar_lea.vmem %s540_s3, 16  ;;  %s661_s30 = scalar_lea.vmem %s540_s3, 32 }
   0x9   :  { %v139_v34 = vand.u32 4294901760, %v138_v25  ;;  %vm520_vm4 = vcmp.lt.s32.totalorder %v738_v11, 2  ;;  %vm523_vm5 = vcmask 58368   ;;  %vm531_vm6 = vcmask 57344   ;;  %p658_p0 = scmp.ne.s32.totalorder %s540_s3, %s657_s4  ;;  %p662_p1 = scmp.lt.s32.totalorder %s540_s3, %s540_s3 }
   0xa   :  { %vm35_vm3 = vcmp.eq.s32.totalorder %v34_v21, 1  ;;  %603 = vmatpush3.msra.mxu0 %v51_v17  ;;  %576 = vmatpush3.msra.mxu1 %v51_v17  ;;  %v127_v32 = vand.u32 4294901760, %v126_v27  ;;  %v134_v33 = vand.u32 4294901760, %v133_v28  ;;  %p663_p2 = scmp.lt.s32.totalorder %s661_s30, %s657_s4 }
   0xb   :  { %v36_v24 = vsel %vm35_vm3, %v29_v20, 0.0  ;;  %637 = vmatprep.subr.bf16.mxu0 %v681_v3  ;;  %628 = vmatprep.subr.bf16.mxu1 %v681_v3  ;;  %v140_v38 = vsub.f32 %v138_v25, %v139_v34 }
   0xc   :  { %v42_v26 = vsel %vm40_vm2, %v36_v24, 0  ;;  %v629_v37 = vpack.c.bf16 %v134_v33, %v127_v32  ;;  %p664_p3 = por %p663_p2, %p662_p1 }
   0xd   :  { %v112_v29 = vand.u32 4294901760, %v42_v26  ;;  %v141_v40 = vand.u32 4294901760, %v140_v38 }
   0xe   :  { %p665_p4 = pnand %p664_p3, %p658_p0 }
   0xf   :  { %v113_v30 = vsub.f32 %v42_v26, %v112_v29 }
  0x11   :  { %v114_v35 = vand.u32 4294901760, %v113_v30 }
  0x13   :  { %605 = vmatmul.mubr.f32.vlgmr.msra.gmra.mrb[0].mxu0 %v114_v35  ;;  %v115_v36 = vsub.f32 %v113_v30, %v114_v35 }
  0x14   :  { %639 = vmatpush3.bf16.msra.mxu0 %v638_v31  ;;  %613 = vmatprep.mubr.msk.f32.mxu0 %vm682_vm0, %v683_v8 }
  0x15   :  { %v116_v39 = vand.u32 4294901760, %v115_v36  ;;  %611 = vmatprep.subr.mxu0 %v683_v8 }
  0x17   :  { %578 = vmatmul.mubr.f32.vlgmr.msra.gmra.mrb[0].mxu1 %v116_v39 }
  0x18   :  { %630 = vmatpush3.bf16.msra.mxu1 %v629_v37  ;;  %612 = vmatpush3.msra.mxu0 %v139_v34 }
  0x19   :  { %584 = vmatprep.subr.mxu1 %v683_v8  ;;  %640 = vmatprep.subr.bf16.mxu0 %v681_v3 }
  0x1a   :  { %586 = vmatprep.mubr.msk.f32.mxu1 %vm682_vm0, %v683_v8 }
  0x1b   :  { %614 = vmatmul.mubr.f32.vlgmr.msra.gmra.mrb[0].mxu0 %v112_v29 }
  0x1c   :  { %585 = vmatpush3.msra.mxu1 %v141_v40  ;;  %642 = vmatpush3.bf16.msra.mxu0 %v626_v12 }
  0x1d   :  { %631 = vmatprep.subr.bf16.mxu1 %v681_v3  ;;  %620 = vmatprep.subr.mxu0 %v683_v8 }
  0x1e   :  { %622 = vmatprep.mubr.msk.f32.mxu0 %vm682_vm0, %v683_v8 }
  0x1f   :  { %587 = vmatmul.mubr.f32.vlgmr.msra.gmra.mrb[0].mxu1 %v112_v29 }
  0x20   :  { %633 = vmatpush3.bf16.msra.mxu1 %v632_v41  ;;  %621 = vmatpush3.msra.mxu0 %v51_v17 }
  0x21   :  { %593 = vmatprep.subr.mxu1 %v683_v8  ;;  %595 = vmatprep.mubr.msk.f32.mxu1 %vm682_vm0, %v683_v8 }
  0x23   :  { %623 = vmatmul.mubr.f32.vlgmr.msra.gmra.mrb[0].mxu0 %v112_v29 }
  0x24   :  { %594 = vmatpush3.msra.mxu1 %v138_v25 }
  0x27   :  { %596 = vmatmul.mubr.f32.vlgmr.msra.gmra.mrb[0].mxu1 %v113_v30 }
  0xf6   :  { %v512_v42 = vpop.f32.mrb[0].mxu0 }
  0xf7   :  { %v624_v43 = vpop.f32.mrb[1].mxu0 }
  0xfa   :  { %v282_v45 = vpop.f32.mrb[0].mxu1 }
  0xfb   :  { %v643_v46 = vadd.f32 %v512_v42, %v282_v45  ;;  %v597_v47 = vpop.f32.mrb[1].mxu1 }
  0xfd   :  { %v521_v48 = vmul.f32 %v643_v46, %v25_v44 }
  0xff   :  { %v522_v49 = vsel %vm520_vm4, %v521_v48, 0.0 }
 0x100   :  { %v524_v50 = vsel %vm523_vm5, %v522_v49, 0.0 }
 0x101   :  { %v525_v51 = vrot.slane %v524_v50, 4 }
 0x103   :  { %v526_v52 = vadd.f32 %v525_v51, %v524_v50 }
 0x105   :  { %v527_v53 = vrot.slane %v526_v52, 2 }
 0x107   :  { %v528_v54 = vadd.f32 %v527_v53, %v526_v52 }
 0x109   :  { %v529_v55 = vrot.slane %v528_v54, 1 }
 0x10b   :  { %v530_v56 = vadd.f32 %v529_v55, %v528_v54 }
 0x10d   :  { %532 = vst.msk [vmem:[#allocation2] sm:$0x1] %vm531_vm6, %v530_v56 }
 0x10e   :  { %668 = shalt.err (!%p665_p4)
}
 0x10f   :  { %s669_s8 = scalar_lea.hbm %s782_s5, 16 }
 0x110   :  { %p670_p5 = scmp.ne.s32.totalorder %s782_s5, %s669_s8  ;;  %p673_p6 = scmp.lt.u32.totalorder %s669_s8, %s782_s5 }
 0x112   :  { %p675_p7 = pnand %p673_p6, %p670_p5 }
 0x114   :  { %678 = shalt.err (!%p675_p7)
}
 0x115   :  { %542 = dma.vmem_to_hbm [thread:$0]  %s540_s3, 16, %s782_s5, [#allocation3]  }
 0x116   :  { %679 = dma.done.wait [#allocation3], 16  }
 0x117   :  { %680 = vsyncadd [#allocation3], 4294967280 }
 0x118   :  { %546 = vsyncpa [#allocation3], 1 }

</bundles_post_ra>
